<compile_context>
chip_gen: v6e
topology: v6e:2x2x1
jax: 0.10.0
libtpu: 0.0.40
codegen_flags: <defaults>
</compile_context>

<pallas_src>
import functools

import jax
import jax.numpy as jnp
from jax import lax
from jax.experimental import pallas as pl
from jax.experimental.pallas import tpu as pltpu


# ---------------------------------------------------------------------------
# VMEM budgeting helpers (generation-aware).
# ---------------------------------------------------------------------------
def _round_up(x, m):
    return ((x + m - 1) // m) * m


def _vmem_limit_bytes():
    """Scoped VMEM limit to request, derived from the physical capacity."""
    try:
        phys = int(pltpu.get_tpu_info().vmem_capacity_bytes)
    except Exception:
        phys = 64 << 20  # conservative default (v7x per-TC physical)
    # Leave headroom for compiler-internal scratch / semaphores / spill.
    return min(int(phys * 0.75), 100 << 20)


def _pick_n_tile(C, n_pad128, budget):
    """Largest lane-aligned N tile whose two-pass working set fits `budget`.

    Pass-2 live bytes ~ double-buffered f32 (C, tn) x tile + double-buffered
    f32 (C, tn) out tile (16 B / (C, tn) element) plus the resident bf16
    attention block and the pass-1 f32 accumulator (~3 * C*C*4).
    """
    fixed = 3 * C * C * 4
    avail = max(budget - fixed, 16 * C * 128)  # always allow at least tn=128
    tn = min(2048, avail // (16 * C))
    tn = max(128, (tn // 128) * 128)
    return min(tn, n_pad128)


# ---------------------------------------------------------------------------
# Fused single-pass kernel (per-batch slab resident in VMEM).
# ---------------------------------------------------------------------------
def _fused_kernel(gamma_ref, x_ref, o_ref):
    """out = gamma * (tanh(rowmax(x x^T) - x x^T) @ x) + x for one batch."""
    x = x_ref[...]                                   # (C, N) f32
    xb = x.astype(jnp.bfloat16)
    # Gram = x @ x^T expressed as a contraction over the N axis of *both*
    # operands: MXU-friendly, no explicit transpose / duplicate VMEM slab.
    energy = lax.dot_general(
        xb, xb,
        dimension_numbers=(((1,), (1,)), ((), ())),
        preferred_element_type=jnp.float32,
    )                                                # (C, C) f32
    e_max = jnp.max(energy, axis=-1, keepdims=True)
    att = jnp.tanh(e_max - energy).astype(jnp.bfloat16)
    out = jnp.dot(att, xb, preferred_element_type=jnp.float32)
    o_ref[...] = (gamma_ref[0] * out + x).astype(o_ref.dtype)


# ---------------------------------------------------------------------------
# Two-pass streaming fallback (VMEM bounded to O(C*tn + C*C)).
# ---------------------------------------------------------------------------
def _energy_kernel(x_ref, att_ref, acc_ref):
    """Pass 1: accumulate the channel Gram matrix, finalize bf16 attention."""
    nt = pl.program_id(1)

    @pl.when(nt == 0)
    def _():
        acc_ref[...] = jnp.zeros_like(acc_ref)

    xb = x_ref[...].astype(jnp.bfloat16)             # (C, tn) bf16
    acc_ref[...] += lax.dot_general(
        xb, xb,
        dimension_numbers=(((1,), (1,)), ((), ())),
        preferred_element_type=jnp.float32,
    )

    @pl.when(nt == pl.num_programs(1) - 1)
    def _():
        energy = acc_ref[...]                        # (C, C) f32
        e_max = jnp.max(energy, axis=-1, keepdims=True)
        att_ref[...] = jnp.tanh(e_max - energy).astype(att_ref.dtype)


def _apply_kernel(gamma_ref, att_ref, x_ref, o_ref):
    """Pass 2: out = gamma * (attention @ x) + x on a lane-dense (C, tn) tile."""
    x = x_ref[...]                                   # (C, tn) f32
    out = jnp.dot(att_ref[...], x.astype(jnp.bfloat16),
                  preferred_element_type=jnp.float32)
    o_ref[...] = (gamma_ref[0] * out + x).astype(o_ref.dtype)


# ---------------------------------------------------------------------------
# Wrapper.
# ---------------------------------------------------------------------------
@functools.partial(jax.jit, static_argnames=("force_two_pass",))
def cam_module_forward(x, gamma, *, force_two_pass=False):
    """x: (B, C, H, W) float32, gamma: (1,) float32 -> (B, C, H, W) float32."""
    B, C, H, W = x.shape
    N = H * W
    xf = x.reshape(B, C, N)          # row-major, same as torch .view(B, C, -1)

    vmem_limit = _vmem_limit_bytes()
    budget = int(vmem_limit * 0.7)

    n_pad128 = _round_up(N, 128)
    # Rough live-bytes estimate for the fused path: double-buffered f32 input
    # + output slabs, a bf16 copy, an f32 matmul result, plus (C, C) terms.
    fused_bytes = 22 * C * n_pad128 + 8 * C * C
    use_fused = (not force_two_pass) and fused_bytes <= budget

    compiler_params_1d = pltpu.CompilerParams(
        dimension_semantics=("parallel",),
        vmem_limit_bytes=vmem_limit,
    )

    if use_fused:
        # Zero-pad N to a lane-aligned width (exact for Gram and apply).
        if n_pad128 != N:
            xf_p = jnp.pad(xf, ((0, 0), (0, 0), (0, n_pad128 - N)))
        else:
            xf_p = xf
        out_flat = pl.pallas_call(
            _fused_kernel,
            out_shape=jax.ShapeDtypeStruct((B, C, n_pad128), x.dtype),
            grid_spec=pltpu.PrefetchScalarGridSpec(
                num_scalar_prefetch=0,
                grid=(B,),
                in_specs=[
                    pl.BlockSpec(memory_space=pltpu.SMEM),                 # gamma
                    pl.BlockSpec((None, C, n_pad128), lambda b: (b, 0, 0)),  # x
                ],
                out_specs=pl.BlockSpec((None, C, n_pad128), lambda b: (b, 0, 0)),
            ),
            compiler_params=compiler_params_1d,
        )(gamma, xf_p)
        return out_flat[:, :, :N].reshape(B, C, H, W)

    # ---- Two-pass streaming fallback --------------------------------------
    tn = _pick_n_tile(C, n_pad128, budget)
    n_final = _round_up(N, tn)
    if n_final != N:
        xf_p = jnp.pad(xf, ((0, 0), (0, 0), (0, n_final - N)))
    else:
        xf_p = xf
    n_tiles = n_final // tn

    # Pass 1: attention = tanh(rowmax(x x^T) - x x^T) per batch, emitted bf16.
    attention = pl.pallas_call(
        _energy_kernel,
        out_shape=jax.ShapeDtypeStruct((B, C, C), jnp.bfloat16),
        grid_spec=pltpu.PrefetchScalarGridSpec(
            num_scalar_prefetch=0,
            grid=(B, n_tiles),
            in_specs=[
                pl.BlockSpec((None, C, tn), lambda b, nt: (b, 0, nt)),
            ],
            out_specs=pl.BlockSpec((None, C, C), lambda b, nt: (b, 0, 0)),
            scratch_shapes=[pltpu.VMEM((C, C), jnp.float32)],
        ),
        compiler_params=pltpu.CompilerParams(
            dimension_semantics=("parallel", "arbitrary"),
            vmem_limit_bytes=vmem_limit,
        ),
    )(xf_p)

    # Pass 2: out = gamma * (attention @ x) + x, streamed over N tiles.
    out_flat = pl.pallas_call(
        _apply_kernel,
        out_shape=jax.ShapeDtypeStruct((B, C, n_final), x.dtype),
        grid_spec=pltpu.PrefetchScalarGridSpec(
            num_scalar_prefetch=0,
            grid=(B, n_tiles),
            in_specs=[
                pl.BlockSpec(memory_space=pltpu.SMEM),                   # gamma
                pl.BlockSpec((None, C, C), lambda b, nt: (b, 0, 0)),     # attention
                pl.BlockSpec((None, C, tn), lambda b, nt: (b, 0, nt)),   # x tile
            ],
            out_specs=pl.BlockSpec((None, C, tn), lambda b, nt: (b, 0, nt)),
        ),
        compiler_params=pltpu.CompilerParams(
            dimension_semantics=("parallel", "parallel"),
            vmem_limit_bytes=vmem_limit,
        ),
    )(gamma, attention, xf_p)

    return out_flat[:, :, :N].reshape(B, C, H, W)


def cam_module_ref(x, gamma):
    """Pure-JAX (f32) reference mirroring the PyTorch forward."""
    B, C, H, W = x.shape
    xf = x.reshape(B, C, -1)                         # proj_query / value
    energy = jnp.einsum("bcn,bdn->bcd", xf, xf)      # bmm(q, k^T)
    energy_new = jnp.max(energy, axis=-1, keepdims=True) - energy
    attention = jnp.tanh(energy_new)                 # tanh attention (per spec)
    out = jnp.einsum("bcd,bdn->bcn", attention, xf)
    out = out.reshape(B, C, H, W)
    return gamma[0] * out + x


if __name__ == "__main__":
    key = jax.random.PRNGKey(0)
    B, C, H, W = 2, 4, 16, 16
    x = jax.random.normal(key, (B, C, H, W), dtype=jnp.float32)

    # Module __init__: gamma = Parameter(torch.zeros(1)).
    gamma0 = jnp.zeros((1,), dtype=jnp.float32)
    gamma1 = jnp.array([0.5], dtype=jnp.float32)
    ref0 = cam_module_ref(x, gamma0)
    ref1 = cam_module_ref(x, gamma1)

    for force_two_pass in (False, True):
        # gamma = 0 -> pure f32 residual, must match tightly.
        out0 = jax.block_until_ready(
            cam_module_forward(x, gamma0, force_two_pass=force_two_pass))
        assert out0.shape == x.shape
        assert jnp.allclose(out0, ref0, atol=1e-5, rtol=1e-5)

        # Nonzero gamma exercises the attention path; kernel matmuls use bf16
        # operands on the MXU (f32 accumulation), so compare against the
        # pure-f32 reference with a bf16-appropriate tolerance.
        out1 = jax.block_until_ready(
            cam_module_forward(x, gamma1, force_two_pass=force_two_pass))
        assert jnp.allclose(out1, ref1, atol=3e-2, rtol=3e-2)

    print("KERNEL_OK")
</pallas_src>

<mosaic_0001>
module attributes {stable_mosaic.version = 11 : i64} {
  func.func @_fused_kernel(%arg0: i32, %arg1: memref<1xf32, #tpu.memory_space<smem>>, %arg2: memref<1x4x256xf32, #tpu.memory_space<vmem>>, %arg3: memref<1x4x256xf32, #tpu.memory_space<vmem>>) attributes {dimension_semantics = [#tpu.dimension_semantics<parallel>], iteration_bounds = array<i64: 2>, scalar_prefetch = 0 : i64, scratch_operands = 0 : i64, tpu.core_type = #tpu.core_type<tc>, window_params = [{transform_indices = @transform_0, window_bounds = array<i64: 1>}, {transform_indices = @transform_1, window_bounds = array<i64: 1, 4, 256>}, {transform_indices = @transform_2, window_bounds = array<i64: 1, 4, 256>}]} {
    %c0 = arith.constant 0 : index
    %c0_0 = arith.constant 0 : index
    %c0_1 = arith.constant 0 : index
    %0 = vector.load %arg2[%c0, %c0_0, %c0_1] : memref<1x4x256xf32, #tpu.memory_space<vmem>>, vector<1x4x256xf32>
    %1 = vector.shape_cast %0 : vector<1x4x256xf32> to vector<4x256xf32>
    %2 = arith.truncf %1 : vector<4x256xf32> to vector<4x256xbf16>
    %cst = arith.constant dense<0.000000e+00> : vector<4x4xf32>
    %3 = tpu.matmul %2, %2, %cst {dimension_numbers = #tpu.dot_dimension_numbers<[1], [1], [0], [0], [0, 0, 1, 0], [], []>} : vector<4x256xbf16>, vector<4x256xbf16>, vector<4x4xf32> -> vector<4x4xf32>
    %cst_2 = arith.constant dense<0xFF800000> : vector<4xf32>
    %4 = vector.multi_reduction <maximumf>, %3, %cst_2 [1] : vector<4x4xf32> to vector<4xf32>
    %5 = vector.shape_cast %4 : vector<4xf32> to vector<4x1xf32>
    %6 = vector.broadcast %5 : vector<4x1xf32> to vector<4x4xf32>
    %7 = arith.subf %6, %3 : vector<4x4xf32>
    %8 = math.tanh %7 : vector<4x4xf32>
    %9 = arith.truncf %8 : vector<4x4xf32> to vector<4x4xbf16>
    %cst_3 = arith.constant dense<0.000000e+00> : vector<4x256xf32>
    %10 = tpu.matmul %9, %2, %cst_3 {dimension_numbers = #tpu.dot_dimension_numbers<[1], [0], [0], [1], [0, 0, 1, 1], [], []>} : vector<4x4xbf16>, vector<4x256xbf16>, vector<4x256xf32> -> vector<4x256xf32>
    %c0_4 = arith.constant 0 : index
    %11 = memref.load %arg1[%c0_4] : memref<1xf32, #tpu.memory_space<smem>>
    %12 = vector.broadcast %11 : f32 to vector<4x256xf32>
    %13 = arith.mulf %12, %10 : vector<4x256xf32>
    %14 = arith.addf %13, %1 : vector<4x256xf32>
    %c0_5 = arith.constant 0 : index
    %c0_6 = arith.constant 0 : index
    %c0_7 = arith.constant 0 : index
    %15 = vector.load %arg3[%c0_5, %c0_6, %c0_7] : memref<1x4x256xf32, #tpu.memory_space<vmem>>, vector<1x4x256xf32>
    %16 = vector.shape_cast %15 : vector<1x4x256xf32> to vector<4x256xf32>
    %17 = vector.shape_cast %14 : vector<4x256xf32> to vector<1x4x256xf32>
    tpu.vector_store %arg3[%c0_5, %c0_6, %c0_7], %17 {strides = array<i32>} : memref<1x4x256xf32, #tpu.memory_space<vmem>>, vector<1x4x256xf32>,
    return
  }
  func.func @transform_0(%arg0: i32) -> i32 {
    %c0_i32 = arith.constant 0 : i32
    %c0_i32_0 = arith.constant 0 : i32
    return %c0_i32 : i32
  }
  func.func @transform_1(%arg0: i32) -> (i32, i32, i32) {
    %c0_i32 = arith.constant 0 : i32
    %c0_i32_0 = arith.constant 0 : i32
    %c0_i32_1 = arith.constant 0 : i32
    return %arg0, %c0_i32, %c0_i32_0 : i32, i32, i32
  }
  func.func @transform_2(%arg0: i32) -> (i32, i32, i32) {
    %c0_i32 = arith.constant 0 : i32
    %c0_i32_0 = arith.constant 0 : i32
    %c0_i32_1 = arith.constant 0 : i32
    return %arg0, %c0_i32, %c0_i32_0 : i32, i32, i32
  }
}

</mosaic_0001>

<bundles_post_ra>
// kernel: cam_module_forward.1
= control target key start
LH: loop header
LB: loop body
LE: loop exit
PB: predicated region body
PF: predicated region fallthrough
CT: control target
= control target key end

     0   :  { %s371_s11 = smov 0   ;;  %s395_s0 = inlined_call_operand.<no memory space> [shape: f32[1], index: 0, kind: input, shape index: {}]   ;;  %s396_s1 = inlined_call_operand.vmem [shape: f32[2,4,256], index: 1, kind: input, shape index: {}]   ;;  %s397_s2 = inlined_call_operand.vmem [shape: f32[2,4,256], index: 2, kind: output, shape index: {}]  }
   0x1   :  { %7 = sst [smem:[#allocation2]] %s395_s0 }
   0x2 LB: > { %s317_s12 = sadd.s32 4294967295, %s350_s11   ;;  %p321_p0 = scmp.ge.s32.totalorder %s350_s11, 1  ;;  %s350_s11 = sphi %s371_s11, %s13_s11  }
   0x3   : > { %p113_p1 = scmp.lt.s32.totalorder %s350_s11, 3 }
   0x5   : > { %p114_p2 = pnand %p321_p0, %p113_p1 }
   0x6   : > { %p135_p3 = scmp.lt.s32.totalorder (!%p114_p2), %s317_s12, 1  ;;  %s251_s16 = sld [smem:[#allocation2]] (!%p114_p2) }
   0x7   : > { %117 = sbr.rel (%p114_p2) target bundleno = 580 (0x244), region = 28 }
   0xc   : > { %s399_s12 = smov (!%p135_p3, %s317_s12), 1  ;;  %vm192_vm0 = vcmask 27648   ;;  %vm203_vm1 = vcmask 1041408   ;;  %v352_v10 = vmov 0   ;;  %vm199_vm2 = vcmask 31744  }
   0xd   : > { %s330_s0 = sshll.u32 %s399_s12, 3  ;;  %242 = vmatprep.mubr.bf16.mxu1 %v352_v10  ;;  %v252_v15 = vstv %s251_s16 }
   0xe   : > { %s139_s15 = scalar_lea.vmem %s396_s1, %s330_s0  ;;  %s144_s19 = scalar_lea.vmem %s397_s2, %s330_s0 }
   0xf   : > { %v146_v0 = vld [vmem:[%s139_s15] sm:$0xff] }
  0x10   : > { %v148_v1 = vcombine.high %v146_v0, %v146_v0  ;;  %v150_v2 = vpack.c.bf16 %v146_v0, %v146_v0 }
  0x12   : > { %v151_v3 = vpack.c.bf16 %v148_v1, %v148_v1  ;;  %v205_v9 = vsel %vm203_vm1, %v150_v2, 0 }
  0x14   : > { %166 = vmatprep.subr.bf16.mxu0 %v151_v3  ;;  %184 = vmatprep.mubr.bf16.mxu0 %v151_v3 }
  0x15   : > { %167 = vmatpush1.bf16.xpose.msra.mxu0 %v150_v2  ;;  %326 = vmatprep.subr.msk.bf16.mxu1 %vm203_vm1, %v151_v3 }
  0x16   : > { %225 = vmatpush1.bf16.msra.mxu1 %v205_v9 }
  0x1c   : > { %185 = vmatmul.mubr.bf16.vlgmr.msra.gmra.mxu0 %v150_v2 }
  0xdc   : > { %v186_v4 = vpop.f32.mrf.mxu0 }
  0xdd   : > { %v193_v5 = vsel %vm192_vm0, %v186_v4, -inf }
  0xde   : > { %v188_v6 = vpop.f32.mrf.mxu0  ;;  %194 = vmax.xlane.f32.xlu0 %v193_v5 }
  0xe0   : > { %v189_v7 = vpop.f32.mrf.mxu0 }
  0xe2   : > { %v190_v8 = vpop.f32.mrf.mxu0 }
 0x167   : > { %v195_v11 = vpop.xlane.xlu0 %194 }
 0x168   : > { %v196_v12 = vsub.f32 %v195_v11, %v186_v4 }
 0x16a   : > { %342 = vtanh.f32 %v196_v12 }
 0x177   : > { %v343_v13 = vpop.eup %342 }
 0x178   : > { %v198_v14 = vpack.c.bf16 %v343_v13, %v343_v13 }
 0x17a   : > { %327 = vmatmul.mubr.msk.bf16.vlgmr.msra.gmra.mxu1 %vm199_vm2, %v198_v14 }
 0x23a   : > { %v244_v16 = vpop.f32.mrf.mxu1 }
 0x23b   : > { %v253_v17 = vmul.f32 %v252_v15, %v244_v16 }
 0x23c   : > { %v246_v18 = vpop.f32.mrf.mxu1 }
 0x23d   : > { %v254_v19 = vmul.f32 %v252_v15, %v246_v18  ;;  %v255_v21 = vadd.f32 %v253_v17, %v146_v0 }
 0x23e   : > { %v248_v20 = vpop.f32.mrf.mxu1 }
 0x23f   : > { %v256_v22 = vadd.f32 %v254_v19, %v148_v1 }
 0x240   : > { %v249_v23 = vpop.f32.mrf.mxu1 }
 0x241   : > { %v259_v24 = vcombine.low %v255_v21, %v256_v22 }
 0x243   : > { %261 = vst [vmem:[%s144_s19] sm:$0xff] %v259_v24 }
 0x244 PF: > { %s13_s11 = sadd.s32 1, %s350_s11  }
 0x245   : > { %p10_p4 = scmp.ge.s32.totalorder %s13_s11, 4  }
 0x247   :  { %12 = sbr.rel (!%p10_p4) target bundleno = 2 (0x2), region = 58 }

</bundles_post_ra>
